<compile_context>
chip_gen: v6e
topology: v6e:2x2x1
jax: 0.10.0
libtpu: 0.0.40
codegen_flags: <defaults>
</compile_context>

<pallas_src>
import functools

import jax
import jax.numpy as jnp
from jax import lax
from jax.experimental import pallas as pl
from jax.experimental.pallas import tpu as pltpu

_LANE = 128      # lane width (last dim)
_SUBLANE = 8     # f32 sublane count (second-to-last dim)


def _round_up(x, m):
    return ((x + m - 1) // m) * m


def _pad2d(a, rows, cols):
    r, c = a.shape
    return jnp.pad(a, ((0, rows - r), (0, cols - c)))


def _softplus(s):
    # Numerically-stable softplus; matches F.softplus(beta=1) semantics.
    return jnp.maximum(s, 0.0) + jnp.log1p(jnp.exp(-jnp.abs(s)))


def policy_kernel(x_ref,
                  w1_ref, b1_ref,
                  w2_ref, b2_ref,
                  wout_ref, bout_ref,
                  out_ref, *, out_size):
    x = x_ref[...]

    h1 = jnp.dot(x, w1_ref[...], preferred_element_type=jnp.float32) + b1_ref[...]
    h1 = jnp.maximum(h1, 0.0)

    h2 = jnp.dot(h1, w2_ref[...], preferred_element_type=jnp.float32) + b2_ref[...]
    h2 = jnp.maximum(h2, 0.0)

    # Fused mu|sigma head: one matmul, one lane-dense output tile.
    pre = jnp.dot(h2, wout_ref[...], preferred_element_type=jnp.float32) + bout_ref[...]
    col = lax.broadcasted_iota(jnp.int32, pre.shape, 1)
    mu_part = 2.0 * jnp.tanh(pre)
    sig_part = _softplus(pre)
    out_ref[...] = jnp.where(col < out_size, mu_part, sig_part)


def policy_forward(x, params, *, tb_max=512):
    """x: [B, input_size] f32.  params: dict from init_params.

    Returns (mu, sigma), each [B, output_size] f32.
    """
    B, in_size = x.shape
    hid = params["w1"].shape[1]
    out_size = params["wmu"].shape[1]

    # Hardware-friendly padded sizes.
    in_p = _round_up(in_size, _LANE)
    hid_p = _round_up(hid, _LANE)
    out2_p = _round_up(2 * out_size, _LANE)

    # Batch tiling: TB rows per grid step (multiple of the f32 sublane).
    TB = min(tb_max, _round_up(B, _SUBLANE))
    B_p = _round_up(B, TB)

    x_p = _pad2d(x.astype(jnp.float32), B_p, in_p)
    w1 = _pad2d(params["w1"], in_p, hid_p)
    b1 = _pad2d(params["b1"], 1, hid_p)
    w2 = _pad2d(params["w2"], hid_p, hid_p)
    b2 = _pad2d(params["b2"], 1, hid_p)
    wout = _pad2d(jnp.concatenate([params["wmu"], params["wsig"]], axis=1),
                  hid_p, out2_p)
    bout = _pad2d(jnp.concatenate([params["bmu"], params["bsig"]], axis=1),
                  1, out2_p)

    grid = (B_p // TB,)

    def batch_map(i):      # activation tiles stream over the batch
        return (i, 0)

    def resident_map(i):   # weights/biases stay VMEM-resident across the grid
        return (0, 0)

    in_specs = [
        pl.BlockSpec((TB, in_p), batch_map),
        pl.BlockSpec((in_p, hid_p), resident_map),
        pl.BlockSpec((1, hid_p), resident_map),
        pl.BlockSpec((hid_p, hid_p), resident_map),
        pl.BlockSpec((1, hid_p), resident_map),
        pl.BlockSpec((hid_p, out2_p), resident_map),
        pl.BlockSpec((1, out2_p), resident_map),
    ]
    out_specs = pl.BlockSpec((TB, out2_p), batch_map)

    fused = pl.pallas_call(
        functools.partial(policy_kernel, out_size=out_size),
        out_shape=jax.ShapeDtypeStruct((B_p, out2_p), jnp.float32),
        grid=grid,
        in_specs=in_specs,
        out_specs=out_specs,
        compiler_params=pltpu.CompilerParams(
            dimension_semantics=("parallel",)),   # shards batch across TCs on v7x
    )(x_p, w1, b1, w2, b2, wout, bout)

    mu = fused[:B, :out_size]
    sigma = fused[:B, out_size:2 * out_size]
    return mu, sigma


def init_params(key, input_size, hidden_size, output_size):
    """Deterministic synthetic init (uniform, like nn.Linear's default range).

    Weights stored [in_features, out_features] (transpose of PyTorch layout),
    biases stored [1, out_features]."""
    keys = jax.random.split(key, 8)

    def lin(kw, kb, fan_in, fan_out):
        bound = 1.0 / jnp.sqrt(fan_in)
        w = jax.random.uniform(kw, (fan_in, fan_out), jnp.float32, -bound, bound)
        b = jax.random.uniform(kb, (1, fan_out), jnp.float32, -bound, bound)
        return w, b

    w1, b1 = lin(keys[0], keys[1], input_size, hidden_size)
    w2, b2 = lin(keys[2], keys[3], hidden_size, hidden_size)
    wmu, bmu = lin(keys[4], keys[5], hidden_size, output_size)
    wsig, bsig = lin(keys[6], keys[7], hidden_size, output_size)
    return dict(w1=w1, b1=b1, w2=w2, b2=b2,
                wmu=wmu, bmu=bmu, wsig=wsig, bsig=bsig)


def policy_ref(x, p):
    """Pure-JAX reference for verification."""
    h1 = jax.nn.relu(x @ p["w1"] + p["b1"])
    h2 = jax.nn.relu(h1 @ p["w2"] + p["b2"])
    mu = 2.0 * jnp.tanh(h2 @ p["wmu"] + p["bmu"])
    sigma = jax.nn.softplus(h2 @ p["wsig"] + p["bsig"])
    return mu, sigma


if __name__ == "__main__":
    input_size, hidden_size, output_size = 8, 32, 4
    batch = 8

    key = jax.random.PRNGKey(0)
    kx, kp = jax.random.split(key)
    x = jax.random.normal(kx, (batch, input_size), jnp.float32)
    params = init_params(kp, input_size, hidden_size, output_size)

    mu, sigma = policy_forward(x, params)
    mu, sigma = jax.block_until_ready((mu, sigma))

    mu_r, sigma_r = policy_ref(x, params)
    assert mu.shape == (batch, output_size) and sigma.shape == (batch, output_size)
    assert jnp.allclose(mu, mu_r, atol=1e-5, rtol=1e-5)
    assert jnp.allclose(sigma, sigma_r, atol=1e-5, rtol=1e-5)
    assert bool(jnp.all(sigma > 0))

    print("KERNEL_OK")
</pallas_src>

<mosaic_0001>
module attributes {stable_mosaic.version = 11 : i64} {
  func.func @policy_kernel(%arg0: i32, %arg1: memref<8x128xf32, #tpu.memory_space<vmem>>, %arg2: memref<128x128xf32, #tpu.memory_space<vmem>>, %arg3: memref<1x128xf32, #tpu.memory_space<vmem>>, %arg4: memref<128x128xf32, #tpu.memory_space<vmem>>, %arg5: memref<1x128xf32, #tpu.memory_space<vmem>>, %arg6: memref<128x128xf32, #tpu.memory_space<vmem>>, %arg7: memref<1x128xf32, #tpu.memory_space<vmem>>, %arg8: memref<8x128xf32, #tpu.memory_space<vmem>>) attributes {dimension_semantics = [#tpu.dimension_semantics<parallel>], iteration_bounds = array<i64: 1>, scalar_prefetch = 0 : i64, scratch_operands = 0 : i64, tpu.core_type = #tpu.core_type<tc>, window_params = [{transform_indices = @transform_0, window_bounds = array<i64: 8, 128>}, {pipeline_mode = #tpu.pipeline_mode<synchronous>, transform_indices = @transform_1, window_bounds = array<i64: 128, 128>}, {pipeline_mode = #tpu.pipeline_mode<synchronous>, transform_indices = @transform_2, window_bounds = array<i64: 1, 128>}, {pipeline_mode = #tpu.pipeline_mode<synchronous>, transform_indices = @transform_3, window_bounds = array<i64: 128, 128>}, {pipeline_mode = #tpu.pipeline_mode<synchronous>, transform_indices = @transform_4, window_bounds = array<i64: 1, 128>}, {pipeline_mode = #tpu.pipeline_mode<synchronous>, transform_indices = @transform_5, window_bounds = array<i64: 128, 128>}, {pipeline_mode = #tpu.pipeline_mode<synchronous>, transform_indices = @transform_6, window_bounds = array<i64: 1, 128>}, {transform_indices = @transform_7, window_bounds = array<i64: 8, 128>}]} {
    %c0 = arith.constant 0 : index
    %c0_0 = arith.constant 0 : index
    %0 = vector.load %arg1[%c0, %c0_0] : memref<8x128xf32, #tpu.memory_space<vmem>>, vector<8x128xf32>
    %c0_1 = arith.constant 0 : index
    %c0_2 = arith.constant 0 : index
    %1 = vector.load %arg2[%c0_1, %c0_2] : memref<128x128xf32, #tpu.memory_space<vmem>>, vector<128x128xf32>
    %cst = arith.constant dense<0.000000e+00> : vector<8x128xf32>
    %2 = tpu.matmul %0, %1, %cst {dimension_numbers = #tpu.dot_dimension_numbers<[1], [0], [0], [1], [0, 0, 1, 1], [], []>} : vector<8x128xf32>, vector<128x128xf32>, vector<8x128xf32> -> vector<8x128xf32>
    %c0_3 = arith.constant 0 : index
    %c0_4 = arith.constant 0 : index
    %3 = vector.load %arg3[%c0_3, %c0_4] : memref<1x128xf32, #tpu.memory_space<vmem>>, vector<1x128xf32>
    %4 = vector.broadcast %3 : vector<1x128xf32> to vector<8x128xf32>
    %5 = arith.addf %2, %4 : vector<8x128xf32>
    %cst_5 = arith.constant 0.000000e+00 : f32
    %6 = vector.broadcast %cst_5 : f32 to vector<8x128xf32>
    %7 = arith.maximumf %5, %6 : vector<8x128xf32>
    %c0_6 = arith.constant 0 : index
    %c0_7 = arith.constant 0 : index
    %8 = vector.load %arg4[%c0_6, %c0_7] : memref<128x128xf32, #tpu.memory_space<vmem>>, vector<128x128xf32>
    %cst_8 = arith.constant dense<0.000000e+00> : vector<8x128xf32>
    %9 = tpu.matmul %7, %8, %cst_8 {dimension_numbers = #tpu.dot_dimension_numbers<[1], [0], [0], [1], [0, 0, 1, 1], [], []>} : vector<8x128xf32>, vector<128x128xf32>, vector<8x128xf32> -> vector<8x128xf32>
    %c0_9 = arith.constant 0 : index
    %c0_10 = arith.constant 0 : index
    %10 = vector.load %arg5[%c0_9, %c0_10] : memref<1x128xf32, #tpu.memory_space<vmem>>, vector<1x128xf32>
    %11 = vector.broadcast %10 : vector<1x128xf32> to vector<8x128xf32>
    %12 = arith.addf %9, %11 : vector<8x128xf32>
    %cst_11 = arith.constant 0.000000e+00 : f32
    %13 = vector.broadcast %cst_11 : f32 to vector<8x128xf32>
    %14 = arith.maximumf %12, %13 : vector<8x128xf32>
    %c0_12 = arith.constant 0 : index
    %c0_13 = arith.constant 0 : index
    %15 = vector.load %arg6[%c0_12, %c0_13] : memref<128x128xf32, #tpu.memory_space<vmem>>, vector<128x128xf32>
    %cst_14 = arith.constant dense<0.000000e+00> : vector<8x128xf32>
    %16 = tpu.matmul %14, %15, %cst_14 {dimension_numbers = #tpu.dot_dimension_numbers<[1], [0], [0], [1], [0, 0, 1, 1], [], []>} : vector<8x128xf32>, vector<128x128xf32>, vector<8x128xf32> -> vector<8x128xf32>
    %c0_15 = arith.constant 0 : index
    %c0_16 = arith.constant 0 : index
    %17 = vector.load %arg7[%c0_15, %c0_16] : memref<1x128xf32, #tpu.memory_space<vmem>>, vector<1x128xf32>
    %18 = vector.broadcast %17 : vector<1x128xf32> to vector<8x128xf32>
    %19 = arith.addf %16, %18 : vector<8x128xf32>
    %20 = tpu.iota {dimensions = array<i32: 1>} : vector<8x128xi32>
    %21 = math.tanh %19 : vector<8x128xf32>
    %cst_17 = arith.constant 2.000000e+00 : f32
    %22 = vector.broadcast %cst_17 : f32 to vector<8x128xf32>
    %23 = arith.mulf %22, %21 : vector<8x128xf32>
    %cst_18 = arith.constant 0.000000e+00 : f32
    %24 = vector.broadcast %cst_18 : f32 to vector<8x128xf32>
    %25 = arith.maximumf %19, %24 : vector<8x128xf32>
    %26 = math.absf %19 : vector<8x128xf32>
    %cst_19 = arith.constant 0.000000e+00 : f32
    %27 = vector.broadcast %cst_19 : f32 to vector<8x128xf32>
    %28 = arith.subf %27, %26 : vector<8x128xf32>
    %29 = math.exp %28 : vector<8x128xf32>
    %30 = math.log1p %29 : vector<8x128xf32>
    %31 = arith.addf %25, %30 : vector<8x128xf32>
    %c4_i32 = arith.constant 4 : i32
    %32 = vector.broadcast %c4_i32 : i32 to vector<8x128xi32>
    %33 = arith.cmpi slt, %20, %32 : vector<8x128xi32>
    %34 = arith.select %33, %23, %31 : vector<8x128xi1>, vector<8x128xf32>
    %c0_20 = arith.constant 0 : index
    %c0_21 = arith.constant 0 : index
    %35 = vector.load %arg8[%c0_20, %c0_21] : memref<8x128xf32, #tpu.memory_space<vmem>>, vector<8x128xf32>
    tpu.vector_store %arg8[%c0_20, %c0_21], %34 {strides = array<i32>} : memref<8x128xf32, #tpu.memory_space<vmem>>, vector<8x128xf32>,
    return
  }
  func.func @transform_0(%arg0: i32) -> (i32, i32) {
    %c0_i32 = arith.constant 0 : i32
    %c0_i32_0 = arith.constant 0 : i32
    return %arg0, %c0_i32 : i32, i32
  }
  func.func @transform_1(%arg0: i32) -> (i32, i32) {
    %c0_i32 = arith.constant 0 : i32
    %c0_i32_0 = arith.constant 0 : i32
    %c0_i32_1 = arith.constant 0 : i32
    return %c0_i32, %c0_i32_0 : i32, i32
  }
  func.func @transform_2(%arg0: i32) -> (i32, i32) {
    %c0_i32 = arith.constant 0 : i32
    %c0_i32_0 = arith.constant 0 : i32
    %c0_i32_1 = arith.constant 0 : i32
    return %c0_i32, %c0_i32_0 : i32, i32
  }
  func.func @transform_3(%arg0: i32) -> (i32, i32) {
    %c0_i32 = arith.constant 0 : i32
    %c0_i32_0 = arith.constant 0 : i32
    %c0_i32_1 = arith.constant 0 : i32
    return %c0_i32, %c0_i32_0 : i32, i32
  }
  func.func @transform_4(%arg0: i32) -> (i32, i32) {
    %c0_i32 = arith.constant 0 : i32
    %c0_i32_0 = arith.constant 0 : i32
    %c0_i32_1 = arith.constant 0 : i32
    return %c0_i32, %c0_i32_0 : i32, i32
  }
  func.func @transform_5(%arg0: i32) -> (i32, i32) {
    %c0_i32 = arith.constant 0 : i32
    %c0_i32_0 = arith.constant 0 : i32
    %c0_i32_1 = arith.constant 0 : i32
    return %c0_i32, %c0_i32_0 : i32, i32
  }
  func.func @transform_6(%arg0: i32) -> (i32, i32) {
    %c0_i32 = arith.constant 0 : i32
    %c0_i32_0 = arith.constant 0 : i32
    %c0_i32_1 = arith.constant 0 : i32
    return %c0_i32, %c0_i32_0 : i32, i32
  }
  func.func @transform_7(%arg0: i32) -> (i32, i32) {
    %c0_i32 = arith.constant 0 : i32
    %c0_i32_0 = arith.constant 0 : i32
    return %arg0, %c0_i32 : i32, i32
  }
}

</mosaic_0001>

<bundles_post_ra>
// kernel: tpu_custom_call.1
= control target key start
LH: loop header
LB: loop body
LE: loop exit
PB: predicated region body
PF: predicated region fallthrough
CT: control target
= control target key end

     0   :  { %12 = vsyncpa [#allocation3], 0  ;;  %s819_s0 = inlined_call_operand.hbm [shape: f32[8,128], index: 0, kind: input, shape index: {}]   ;;  %s820_s1 = inlined_call_operand.hbm [shape: f32[128,128], index: 1, kind: input, shape index: {}]   ;;  %s821_s2 = inlined_call_operand.vmem [shape: f32[1,128], index: 2, kind: input, shape index: {}]   ;;  %s822_s3 = inlined_call_operand.hbm [shape: f32[128,128], index: 3, kind: input, shape index: {}]   ;;  %s823_s4 = inlined_call_operand.vmem [shape: f32[1,128], index: 4, kind: input, shape index: {}]   ;;  %s824_s5 = inlined_call_operand.hbm [shape: f32[128,128], index: 5, kind: input, shape index: {}]   ;;  %s825_s6 = inlined_call_operand.vmem [shape: f32[1,128], index: 6, kind: input, shape index: {}]   ;;  %s826_s7 = inlined_call_operand.hbm [shape: f32[8,128], index: 7, kind: output, shape index: {}]  }
   0x1   :  { %13 = vsyncpa [#allocation6], 0 }
   0x2   :  { %14 = vsyncpa [#allocation9], 0 }
   0x3   :  { %15 = vsyncpa [#allocation4], 0  ;;  %s683_s24 = smov [#allocation5]  }
   0x4   :  { %s31_s25 = sshll.u32 %s683_s24, 4  ;;  %s32_s25 = int_to_ptr.vmem [resolvable:$true] %s31_s25 }
   0x5   :  { %s583_s26 = scalar_lea.vmem %s32_s25, 2048  ;;  %p588_p1 = scmp.lt.s32.totalorder %s32_s25, %s32_s25 }
   0x6   :  { %p584_p0 = scmp.ne.s32.totalorder %s32_s25, %s583_s26  ;;  %p589_p2 = scmp.lt.s32.totalorder %s583_s26, %s583_s26 }
   0x8   :  { %p590_p3 = por %p589_p2, %p588_p1 }
   0xa   :  { %p591_p4 = pnand %p590_p3, %p584_p0 }
   0xc   :  { %594 = shalt.err (!%p591_p4)
}
   0xd   :  { %s684_s27 = smov 128   ;;  %s685_s28 = smov 8  }
   0xe   :  { %37 = dma.hbm_to_vmem [thread:$0]  %s820_s1, 2048, %s32_s25, [#allocation6], %s684_s27, %s684_s27, %s685_s28  }
   0xf   :  { %s686_s8 = smov [#allocation2]   ;;  %s687_s10 = smov [#allocation7]  }
  0x10   :  { %s22_s9 = sshll.u32 %s686_s8, 4  ;;  %s45_s11 = sshll.u32 %s687_s10, 4  ;;  %s23_s9 = int_to_ptr.vmem [resolvable:$true] %s22_s9  ;;  %s46_s11 = int_to_ptr.vmem [resolvable:$true] %s45_s11 }
  0x11   :  { %s603_s12 = scalar_lea.vmem %s23_s9, 128  ;;  %p608_p6 = scmp.lt.s32.totalorder %s23_s9, %s23_s9 }
  0x12   :  { %p604_p5 = scmp.ne.s32.totalorder %s23_s9, %s603_s12  ;;  %p609_p7 = scmp.lt.s32.totalorder %s603_s12, %s603_s12 }
  0x14   :  { %p610_p8 = por %p609_p7, %p608_p6 }
  0x16   :  { %p611_p9 = pnand %p610_p8, %p604_p5 }
  0x18   :  { %614 = shalt.err (!%p611_p9)
}
  0x19   :  { %25 = dma.hbm_to_vmem [thread:$0]  %s819_s0, 128, %s23_s9, [#allocation3]  }
  0x1a   :  { %s623_s15 = scalar_lea.vmem %s46_s11, 2048  ;;  %p628_p11 = scmp.lt.s32.totalorder %s46_s11, %s46_s11 }
  0x1b   :  { %p624_p10 = scmp.ne.s32.totalorder %s46_s11, %s623_s15  ;;  %p629_p12 = scmp.lt.s32.totalorder %s623_s15, %s623_s15 }
  0x1d   :  { %p630_p13 = por %p629_p12, %p628_p11 }
  0x1f   :  { %p631_p0 = pnand %p630_p13, %p624_p10 }
  0x21   :  { %634 = shalt.err (!%p631_p0)
}
  0x22   :  { %51 = dma.hbm_to_vmem [thread:$0]  %s822_s3, 2048, %s46_s11, [#allocation6], %s684_s27, %s684_s27, %s685_s28  }
  0x23   :  { %s688_s17 = smov [#allocation8]  }
  0x24   :  { %s59_s18 = sshll.u32 %s688_s17, 4  ;;  %s60_s18 = int_to_ptr.vmem [resolvable:$true] %s59_s18 }
  0x25   :  { %s643_s19 = scalar_lea.vmem %s60_s18, 2048  ;;  %p648_p2 = scmp.lt.s32.totalorder %s60_s18, %s60_s18 }
  0x26   :  { %p644_p1 = scmp.ne.s32.totalorder %s60_s18, %s643_s19  ;;  %p649_p3 = scmp.lt.s32.totalorder %s643_s19, %s643_s19 }
  0x28   :  { %p650_p4 = por %p649_p3, %p648_p2 }
  0x2a   :  { %p651_p5 = pnand %p650_p4, %p644_p1 }
  0x2c   :  { %654 = shalt.err (!%p651_p5)
}
  0x2d   :  { %65 = dma.hbm_to_vmem [thread:$0]  %s824_s5, 2048, %s60_s18, [#allocation9], %s684_s27, %s684_s27, %s685_s28  }
  0x2e   :  { %675 = dma.done.wait [#allocation3], 128  }
  0x2f   :  { %676 = vsyncadd [#allocation3], 4294967168 }
  0x30   :  { %677 = dma.done.wait [#allocation6], 4096  }
  0x31   :  { %678 = vsyncadd [#allocation6], 4294963200 }
  0x32   :  { %679 = dma.done.wait [#allocation9], 2048  }
  0x33   :  { %680 = vsyncadd [#allocation9], 4294965248  ;;  %v689_v0 = vmov 0.0   ;;  %vm690_vm0 = vmmov 0   ;;  %v96_v1 = vld [vmem:[#allocation5 + $0x78] sm:$0xff]  ;;  %v95_v2 = vld [vmem:[#allocation5 + $0x70] sm:$0xff] }
  0x34   :  { %455 = vmatprep.subr.mxu0 %v689_v0  ;;  %487 = vmatprep.mubr.msk.f32.mxu0 %vm690_vm0, %v689_v0  ;;  %v94_v3 = vld [vmem:[#allocation5 + $0x68] sm:$0xff]  ;;  %v93_v4 = vld [vmem:[#allocation5 + $0x60] sm:$0xff]  ;;  %v190_v5 = vld [vmem:[#allocation7 + $0x78] sm:$0xff] }
  0x35   :  { %490 = vmatprep.subr.mxu1 %v689_v0  ;;  %522 = vmatprep.mubr.msk.f32.mxu1 %vm690_vm0, %v689_v0  ;;  %v92_v6 = vld [vmem:[#allocation5 + $0x58] sm:$0xff]  ;;  %v189_v7 = vld [vmem:[#allocation7 + $0x70] sm:$0xff]  ;;  %v188_v8 = vld [vmem:[#allocation7 + $0x68] sm:$0xff] }
  0x36   :  { %456 = vmatpush3.msra.mxu0 %v96_v1  ;;  %491 = vmatpush3.msra.mxu1 %v190_v5  ;;  %v91_v9 = vld [vmem:[#allocation5 + $0x50] sm:$0xff]  ;;  %v187_v10 = vld [vmem:[#allocation7 + $0x60] sm:$0xff]  ;;  %v90_v11 = vld [vmem:[#allocation5 + $0x48] sm:$0xff] }
  0x37   :  { %457 = vmatprep.subr.mxu0 %v689_v0  ;;  %492 = vmatprep.subr.mxu1 %v689_v0  ;;  %v186_v12 = vld [vmem:[#allocation7 + $0x58] sm:$0xff]  ;;  %v89_v13 = vld [vmem:[#allocation5 + $0x40] sm:$0xff]  ;;  %v185_v14 = vld [vmem:[#allocation7 + $0x50] sm:$0xff] }
  0x38   :  { %458 = vmatpush3.msra.mxu0 %v95_v2  ;;  %493 = vmatpush3.msra.mxu1 %v189_v7  ;;  %v88_v15 = vld [vmem:[#allocation5 + $0x38] sm:$0xff]  ;;  %v184_v16 = vld [vmem:[#allocation7 + $0x48] sm:$0xff]  ;;  %v87_v17 = vld [vmem:[#allocation5 + $0x30] sm:$0xff] }
  0x39   :  { %459 = vmatprep.subr.mxu0 %v689_v0  ;;  %494 = vmatprep.subr.mxu1 %v689_v0  ;;  %v183_v18 = vld [vmem:[#allocation7 + $0x40] sm:$0xff]  ;;  %v86_v19 = vld [vmem:[#allocation5 + $0x28] sm:$0xff]  ;;  %v182_v20 = vld [vmem:[#allocation7 + $0x38] sm:$0xff] }
  0x3a   :  { %460 = vmatpush3.msra.mxu0 %v94_v3  ;;  %495 = vmatpush3.msra.mxu1 %v188_v8  ;;  %v85_v21 = vld [vmem:[#allocation5 + $0x20] sm:$0xff]  ;;  %v181_v22 = vld [vmem:[#allocation7 + $0x30] sm:$0xff]  ;;  %v84_v23 = vld [vmem:[#allocation5 + $0x18] sm:$0xff] }
  0x3b   :  { %461 = vmatprep.subr.mxu0 %v689_v0  ;;  %496 = vmatprep.subr.mxu1 %v689_v0  ;;  %v180_v24 = vld [vmem:[#allocation7 + $0x28] sm:$0xff]  ;;  %v83_v25 = vld [vmem:[#allocation5 + $0x10] sm:$0xff]  ;;  %v179_v26 = vld [vmem:[#allocation7 + $0x20] sm:$0xff] }
  0x3c   :  { %462 = vmatpush3.msra.mxu0 %v93_v4  ;;  %497 = vmatpush3.msra.mxu1 %v187_v10  ;;  %v82_v27 = vld [vmem:[#allocation5 + $0x8] sm:$0xff]  ;;  %v178_v28 = vld [vmem:[#allocation7 + $0x18] sm:$0xff]  ;;  %v81_v29 = vld [vmem:[#allocation5] sm:$0xff] }
  0x3d   :  { %463 = vmatprep.subr.mxu0 %v689_v0  ;;  %498 = vmatprep.subr.mxu1 %v689_v0  ;;  %v80_v30 = vld [vmem:[#allocation2] sm:$0xff]  ;;  %v177_v31 = vld [vmem:[#allocation7 + $0x10] sm:$0xff]  ;;  %v176_v32 = vld [vmem:[#allocation7 + $0x8] sm:$0xff] }
  0x3e   :  { %464 = vmatpush3.msra.mxu0 %v92_v6  ;;  %499 = vmatpush3.msra.mxu1 %v186_v12  ;;  %v175_v33 = vld [vmem:[#allocation7] sm:$0xff]  ;;  %v284_v34 = vld [vmem:[#allocation8 + $0x78] sm:$0xff]  ;;  %v283_v35 = vld [vmem:[#allocation8 + $0x70] sm:$0xff]  ;;  %v362_v6 = vlaneseq }
  0x3f   :  { %465 = vmatprep.subr.mxu0 %v689_v0  ;;  %500 = vmatprep.subr.mxu1 %v689_v0  ;;  %v282_v36 = vld [vmem:[#allocation8 + $0x68] sm:$0xff]  ;;  %v281_v37 = vld [vmem:[#allocation8 + $0x60] sm:$0xff]  ;;  %v280_v38 = vld [vmem:[#allocation8 + $0x58] sm:$0xff] }
  0x40   :  { %466 = vmatpush3.msra.mxu0 %v91_v9  ;;  %501 = vmatpush3.msra.mxu1 %v185_v14  ;;  %v279_v39 = vld [vmem:[#allocation8 + $0x50] sm:$0xff]  ;;  %v278_v40 = vld [vmem:[#allocation8 + $0x48] sm:$0xff]  ;;  %v277_v41 = vld [vmem:[#allocation8 + $0x40] sm:$0xff]  ;;  %v363_v9 = vand.u32 127, %v362_v6 }
  0x41   :  { %467 = vmatprep.subr.mxu0 %v689_v0  ;;  %502 = vmatprep.subr.mxu1 %v689_v0  ;;  %v276_v42 = vld [vmem:[#allocation8 + $0x38] sm:$0xff]  ;;  %v275_v43 = vld [vmem:[#allocation8 + $0x30] sm:$0xff]  ;;  %v274_v44 = vld [vmem:[#allocation8 + $0x28] sm:$0xff] }
  0x42   :  { %468 = vmatpush3.msra.mxu0 %v90_v11  ;;  %503 = vmatpush3.msra.mxu1 %v184_v16  ;;  %v273_v45 = vld [vmem:[#allocation8 + $0x20] sm:$0xff]  ;;  %v272_v46 = vld [vmem:[#allocation8 + $0x18] sm:$0xff]  ;;  %v271_v52 = vld [vmem:[#allocation8 + $0x10] sm:$0xff]  ;;  %vm381_vm2 = vcmp.lt.s32.totalorder %v363_v9, 4 }
  0x43   :  { %469 = vmatprep.subr.mxu0 %v689_v0  ;;  %504 = vmatprep.subr.mxu1 %v689_v0  ;;  %v401_v47 = vld [vmem:[%s821_s2] ss:$0 sm:$0xff]  ;;  %v270_v53 = vld [vmem:[#allocation8 + $0x8] sm:$0xff]  ;;  %v269_v54 = vld [vmem:[#allocation8] sm:$0xff] }
  0x44   :  { %470 = vmatpush3.msra.mxu0 %v89_v13  ;;  %505 = vmatpush3.msra.mxu1 %v183_v18  ;;  %v402_v55 = vld [vmem:[%s823_s4] ss:$0 sm:$0xff]  ;;  %s691_s4 = smov [#allocation10]  }
  0x45   :  { %471 = vmatprep.subr.mxu0 %v689_v0  ;;  %506 = vmatprep.subr.mxu1 %v689_v0  ;;  %v403_v60 = vld [vmem:[%s825_s6] ss:$0 sm:$0xff]  ;;  %s390_s6 = sshll.u32 %s691_s4, 4  ;;  %s391_s6 = int_to_ptr.vmem [resolvable:$true] %s390_s6 }
  0x46   :  { %472 = vmatpush3.msra.mxu0 %v88_v15  ;;  %507 = vmatpush3.msra.mxu1 %v182_v20  ;;  %s655_s24 = scalar_lea.vmem %s391_s6, 128  ;;  %p660_p7 = scmp.lt.s32.totalorder %s391_s6, %s391_s6 }
  0x47   :  { %473 = vmatprep.subr.mxu0 %v689_v0  ;;  %508 = vmatprep.subr.mxu1 %v689_v0  ;;  %p656_p6 = scmp.ne.s32.totalorder %s391_s6, %s655_s24  ;;  %p661_p8 = scmp.lt.s32.totalorder %s655_s24, %s655_s24 }
  0x48   :  { %474 = vmatpush3.msra.mxu0 %v87_v17  ;;  %509 = vmatpush3.msra.mxu1 %v181_v22 }
  0x49   :  { %475 = vmatprep.subr.mxu0 %v689_v0  ;;  %510 = vmatprep.subr.mxu1 %v689_v0  ;;  %p662_p9 = por %p661_p8, %p660_p7 }
  0x4a   :  { %476 = vmatpush3.msra.mxu0 %v86_v19  ;;  %511 = vmatpush3.msra.mxu1 %v180_v24 }
  0x4b   :  { %477 = vmatprep.subr.mxu0 %v689_v0  ;;  %512 = vmatprep.subr.mxu1 %v689_v0  ;;  %p663_p10 = pnand %p662_p9, %p656_p6 }
  0x4c   :  { %478 = vmatpush3.msra.mxu0 %v85_v21  ;;  %513 = vmatpush3.msra.mxu1 %v179_v26 }
  0x4d   :  { %479 = vmatprep.subr.mxu0 %v689_v0  ;;  %514 = vmatprep.subr.mxu1 %v689_v0 }
  0x4e   :  { %480 = vmatpush3.msra.mxu0 %v84_v23  ;;  %515 = vmatpush3.msra.mxu1 %v178_v28 }
  0x4f   :  { %481 = vmatprep.subr.mxu0 %v689_v0  ;;  %516 = vmatprep.subr.mxu1 %v689_v0 }
  0x50   :  { %482 = vmatpush3.msra.mxu0 %v83_v25  ;;  %517 = vmatpush3.msra.mxu1 %v177_v31 }
  0x51   :  { %483 = vmatprep.subr.mxu0 %v689_v0  ;;  %518 = vmatprep.subr.mxu1 %v689_v0 }
  0x52   :  { %484 = vmatpush3.msra.mxu0 %v82_v27  ;;  %519 = vmatpush3.msra.mxu1 %v176_v32 }
  0x53   :  { %485 = vmatprep.subr.mxu0 %v689_v0  ;;  %520 = vmatprep.subr.mxu1 %v689_v0 }
  0x54   :  { %486 = vmatpush3.msra.mxu0 %v81_v29  ;;  %521 = vmatpush3.msra.mxu1 %v175_v33 }
  0x55   :  { %488 = vmatmul.mubr.f32.vlgmr.msra.gmra.mxu0 %v80_v30  ;;  %525 = vmatprep.subr.mxu0 %v689_v0 }
  0x56   :  { %557 = vmatprep.mubr.msk.f32.mxu0 %vm690_vm0, %v689_v0  ;;  %526 = vmatpush3.msra.mxu0 %v284_v34 }
  0x57   :  { %527 = vmatprep.subr.mxu0 %v689_v0 }
  0x58   :  { %528 = vmatpush3.msra.mxu0 %v283_v35 }
  0x59   :  { %529 = vmatprep.subr.mxu0 %v689_v0 }
  0x5a   :  { %530 = vmatpush3.msra.mxu0 %v282_v36 }
  0x5b   :  { %531 = vmatprep.subr.mxu0 %v689_v0 }
  0x5c   :  { %532 = vmatpush3.msra.mxu0 %v281_v37 }
  0x5d   :  { %533 = vmatprep.subr.mxu0 %v689_v0 }
  0x5e   :  { %534 = vmatpush3.msra.mxu0 %v280_v38 }
  0x5f   :  { %535 = vmatprep.subr.mxu0 %v689_v0 }
  0x60   :  { %536 = vmatpush3.msra.mxu0 %v279_v39 }
  0x61   :  { %537 = vmatprep.subr.mxu0 %v689_v0 }
  0x62   :  { %538 = vmatpush3.msra.mxu0 %v278_v40 }
  0x63   :  { %539 = vmatprep.subr.mxu0 %v689_v0 }
  0x64   :  { %540 = vmatpush3.msra.mxu0 %v277_v41 }
  0x65   :  { %541 = vmatprep.subr.mxu0 %v689_v0 }
  0x66   :  { %542 = vmatpush3.msra.mxu0 %v276_v42 }
  0x67   :  { %543 = vmatprep.subr.mxu0 %v689_v0 }
  0x68   :  { %544 = vmatpush3.msra.mxu0 %v275_v43 }
  0x69   :  { %545 = vmatprep.subr.mxu0 %v689_v0 }
  0x6a   :  { %546 = vmatpush3.msra.mxu0 %v274_v44 }
  0x6b   :  { %547 = vmatprep.subr.mxu0 %v689_v0 }
  0x6c   :  { %548 = vmatpush3.msra.mxu0 %v273_v45 }
  0x6d   :  { %549 = vmatprep.subr.mxu0 %v689_v0 }
  0x6e   :  { %550 = vmatpush3.msra.mxu0 %v272_v46 }
  0x6f   :  { %551 = vmatprep.subr.mxu0 %v689_v0 }
  0x70   :  { %552 = vmatpush3.msra.mxu0 %v271_v52 }
  0x71   :  { %553 = vmatprep.subr.mxu0 %v689_v0 }
  0x72   :  { %554 = vmatpush3.msra.mxu0 %v270_v53 }
  0x73   :  { %555 = vmatprep.subr.mxu0 %v689_v0 }
  0x74   :  { %556 = vmatpush3.msra.mxu0 %v269_v54 }
 0x115   :  { %v170_v48 = vpop.f32.mrf.mxu0 }
 0x116   :  { %v171_v49 = vadd.f32 %v401_v47, %v170_v48 }
 0x117   :  { %v489_v50 = vpop.f32.mrf.mxu0 }
 0x118   :  { %v174_v51 = vmax.f32 %v171_v49, 0.0 }
 0x11a   :  { %523 = vmatmul.mubr.f32.vlgmr.msra.gmra.mxu1 %v174_v51 }
 0x1da   :  { %v264_v56 = vpop.f32.mrf.mxu1 }
 0x1db   :  { %v265_v57 = vadd.f32 %v402_v55, %v264_v56 }
 0x1dc   :  { %v524_v58 = vpop.f32.mrf.mxu1 }
 0x1dd   :  { %v268_v59 = vmax.f32 %v265_v57, 0.0 }
 0x1df   :  { %558 = vmatmul.mubr.f32.vlgmr.msra.gmra.mxu0 %v268_v59 }
 0x29f   :  { %v358_v61 = vpop.f32.mrf.mxu0 }
 0x2a0   :  { %v359_v62 = vadd.f32 %v403_v60, %v358_v61 }
 0x2a1   :  { %v559_v63 = vpop.f32.mrf.mxu0 }
 0x2a2   :  { %v367_v1 = vand.u32 2147483647, %v359_v62  ;;  %v366_v14 = vmax.f32 %v359_v62, 0.0 }
 0x2a4   :  { %v368_v0 = vsub.f32 0.0, %v367_v1 }
 0x2a6   :  { %v369_v2 = vmul.f32 1.442695, %v368_v0 }
 0x2a8   :  { %569 = vpow2.f32 %v369_v2 }
 0x2b5   :  { %v570_v3 = vpop.eup %569 }
 0x2b6   :  { %v371_v4 = vadd.f32 1.0, %v570_v3  ;;  %v374_v5 = vmul.f32 -0.5, %v570_v3  ;;  %v377_v8 = vand.u32 2147483647, %v570_v3 }
 0x2b8   :  { %571 = vlog2.f32 %v371_v4  ;;  %v375_v7 = vadd.f32 1.0, %v374_v5  ;;  %vm378_vm1 = vcmp.lt.f32.partialorder %v377_v8, 0.0004427343 }
 0x2b9   :  { %573 = vtanh.f32 %v359_v62 }
 0x2ba   :  { %v376_v13 = vmul.f32 %v570_v3, %v375_v7 }
 0x2c5   :  { %v572_v10 = vpop.eup %571 }
 0x2c6   :  { %v574_v11 = vpop.eup %573  ;;  %v373_v12 = vmul.f32 0.6931472, %v572_v10 }
 0x2c7   :  { %v365_v17 = vmul.f32 2.0, %v574_v11 }
 0x2c8   :  { %v379_v15 = vsel %vm378_vm1, %v376_v13, %v373_v12 }
 0x2c9   :  { %v380_v16 = vadd.f32 %v379_v15, %v366_v14 }
 0x2cb   :  { %v382_v18 = vsel %vm381_vm2, %v365_v17, %v380_v16 }
 0x2cc   :  { %383 = vst [vmem:[#allocation10] sm:$0xff] %v382_v18 }
 0x2cd   :  { %666 = shalt.err (!%p663_p10)
}
 0x2ce   :  { %393 = dma.vmem_to_hbm [thread:$0]  %s391_s6, 128, %s826_s7, [#allocation4]  }
 0x2cf   :  { %681 = dma.done.wait [#allocation4], 128  }
 0x2d0   :  { %682 = vsyncadd [#allocation4], 4294967168 }
 0x2d1   :  { %397 = vsyncpa [#allocation3], 1 }
 0x2d2   :  { %398 = vsyncpa [#allocation6], 1 }
 0x2d3   :  { %399 = vsyncpa [#allocation9], 1 }
 0x2d4   :  { %400 = vsyncpa [#allocation4], 1 }

</bundles_post_ra>
